<compile_context>
chip_gen: v6e
topology: v6e:2x2x1
jax: 0.10.0
libtpu: 0.0.40
codegen_flags: <defaults>
</compile_context>

<pallas_src>
import functools

import jax
import jax.numpy as jnp
from jax.experimental import pallas as pl
from jax.experimental.pallas import tpu as pltpu

LANES = 128


def _device_defaults():
    """Per-generation defaults: tile rows, shard count, core-parallel use."""
    kind = ""
    try:
        kind = jax.devices()[0].device_kind.lower()
    except Exception:
        pass
    is_v7 = ("v7" in kind) or ("tpu7" in kind)
    big_vmem = is_v7 or ("v6" in kind)
    tile_rows = 8192 if big_vmem else 4096  # 4 MiB vs 2 MiB per f32 operand tile
    num_shards = 2 if is_v7 else 1          # only v7x has 2 TensorCores / chip
    return tile_rows, num_shards, is_v7


def _mae_kernel(pred_ref, true_ref, out_ref, *, tile_rows, spp, valid_rows):
    s = pl.program_id(0)   # shard axis (one per TensorCore on v7x)
    j = pl.program_id(1)   # reduction axis (row-tile within shard)

    @pl.when(j == 0)
    def _():
        out_ref[...] = jnp.zeros_like(out_ref)

    tile_idx = s * spp + j
    needs_mask = (tile_idx + 1) * tile_rows > valid_rows   # scalar

    # Fast path: fully-interior tile, no mask (keeps the vld slot the limiter).
    @pl.when(jnp.logical_not(needs_mask))
    def _():
        d = jnp.abs(true_ref[...] - pred_ref[...]).astype(jnp.float32)
        out_ref[...] += jnp.sum(d, axis=0, keepdims=True).reshape(1, 1, LANES)

    # Slow path: ragged last tile of the data and/or clamped duplicate tiles
    # of the last shard -- zero out rows past the end of the logical data.
    @pl.when(needs_mask)
    def _():
        d = jnp.abs(true_ref[...] - pred_ref[...]).astype(jnp.float32)
        row0 = tile_idx * tile_rows
        rid = row0 + jax.lax.broadcasted_iota(jnp.int32, d.shape, 0)
        d = jnp.where(rid < valid_rows, d, 0.0)
        out_ref[...] += jnp.sum(d, axis=0, keepdims=True).reshape(1, 1, LANES)


def mae_loss(y_pred, y_true, *, tile_rows=None, num_shards=None):
    """Equivalent of torch.mean(torch.abs(y_true - y_pred))."""
    assert y_pred.shape == y_true.shape, (y_pred.shape, y_true.shape)
    n_elems = int(y_pred.size)
    if n_elems == 0:
        return jnp.float32(0.0)

    def_tile, def_shards, is_v7 = _device_defaults()
    if tile_rows is None:
        tile_rows = def_tile
    if num_shards is None:
        num_shards = def_shards

    p = y_pred.reshape(-1)
    t = y_true.reshape(-1)

    rows = n_elems // LANES
    aligned = rows * LANES

    # Ragged (<128 element) tail: tiny, sum it in plain JAX.  Avoids the
    # whole-tensor jnp.pad copy (2x HBM traffic) the previous version paid.
    tail_sum = jnp.float32(0.0)
    if aligned < n_elems:
        tail_sum = jnp.sum(jnp.abs(t[aligned:] - p[aligned:]).astype(jnp.float32))
    if rows == 0:
        return (tail_sum / jnp.float32(n_elems)).astype(jnp.float32)

    pm = p[:aligned].reshape(rows, LANES)
    tm = t[:aligned].reshape(rows, LANES)

    # dtype-aware sublane tile: 8 for 4-byte, 16 for bf16, 32 for int8/fp8.
    itemsize = int(jnp.dtype(y_pred.dtype).itemsize)
    sub = max(8, 32 // max(itemsize, 1))

    if rows < sub:
        tile_rows = rows                               # full-array block (legal)
    else:
        req = max(sub, (int(tile_rows) // sub) * sub)  # requested, sublane-rounded
        tile_rows = min(req, (rows // sub) * sub)      # never exceed the array

    total_tiles = pl.cdiv(rows, tile_rows)
    num_shards = max(1, min(int(num_shards), total_tiles))
    spp = pl.cdiv(total_tiles, num_shards)             # row-tiles per shard

    def in_map(s, j):
        # Clamp so the DMA never starts past the array; logically-out-of-range
        # tiles (last shard overhang) are zeroed by the in-kernel mask, which
        # uses the *unclamped* tile index.
        return (jnp.minimum(s * spp + j, total_tiles - 1), 0)

    if num_shards > 1 and is_v7:
        # Real 2-TensorCore split on v7x (plain "parallel" doesn't change codegen).
        shard_sem = getattr(pltpu, "CORE_PARALLEL", "parallel")
    else:
        shard_sem = "arbitrary"

    kernel = functools.partial(_mae_kernel, tile_rows=tile_rows, spp=spp,
                               valid_rows=rows)

    partials = pl.pallas_call(
        kernel,
        out_shape=jax.ShapeDtypeStruct((num_shards, 1, LANES), jnp.float32),
        grid_spec=pltpu.PrefetchScalarGridSpec(
            num_scalar_prefetch=0,
            grid=(num_shards, spp),
            in_specs=[
                pl.BlockSpec((tile_rows, LANES), in_map),
                pl.BlockSpec((tile_rows, LANES), in_map),
            ],
            out_specs=pl.BlockSpec((1, 1, LANES), lambda s, j: (s, 0, 0)),
        ),
        compiler_params=pltpu.CompilerParams(
            dimension_semantics=(shard_sem, "arbitrary"),
            vmem_limit_bytes=32 * 1024 * 1024),
    )(pm, tm)

    # Final tiny reduce (num_shards * 128 values) + tail + mean, in plain JAX.
    total = jnp.sum(partials) + tail_sum
    return (total / jnp.float32(n_elems)).astype(jnp.float32)


if __name__ == "__main__":
    key = jax.random.PRNGKey(0)
    k1, k2, k3, k4 = jax.random.split(key, 4)

    # Shape consistent with the module's generic elementwise reduction.
    shape = (2, 4, 16, 16)
    y_pred = jax.random.normal(k1, shape, dtype=jnp.float32)
    y_true = jax.random.normal(k2, shape, dtype=jnp.float32)

    out = jax.block_until_ready(mae_loss(y_pred, y_true))
    ref = jnp.mean(jnp.abs(y_true - y_pred))
    assert jnp.allclose(out, ref, rtol=1e-5, atol=1e-6), (out, ref)

    # Ragged size (numel % 128 != 0): aligned bulk through the kernel,
    # <128-element tail in plain JAX (no whole-tensor pad).
    yp2 = jax.random.normal(k3, (1068,), dtype=jnp.float32)
    yt2 = jax.random.normal(k4, (1068,), dtype=jnp.float32)
    out2 = jax.block_until_ready(mae_loss(yp2, yt2))
    ref2 = jnp.mean(jnp.abs(yt2 - yp2))
    assert jnp.allclose(out2, ref2, rtol=1e-5, atol=1e-6), (out2, ref2)

    print("KERNEL_OK")
</pallas_src>

<mosaic_0001>
module attributes {stable_mosaic.version = 11 : i64} {
  func.func @_mae_kernel(%arg0: i32, %arg1: i32, %arg2: memref<16x128xf32, #tpu.memory_space<vmem>>, %arg3: memref<16x128xf32, #tpu.memory_space<vmem>>, %arg4: memref<1x1x128xf32, #tpu.memory_space<vmem>>) attributes {dimension_semantics = [#tpu.dimension_semantics<arbitrary>, #tpu.dimension_semantics<arbitrary>], iteration_bounds = array<i64: 1, 1>, scalar_prefetch = 0 : i64, scratch_operands = 0 : i64, tpu.core_type = #tpu.core_type<tc>, window_params = [{transform_indices = @transform_0, window_bounds = array<i64: 16, 128>}, {transform_indices = @transform_1, window_bounds = array<i64: 16, 128>}, {transform_indices = @transform_2, window_bounds = array<i64: 1, 1, 128>}]} {
    %c0_i32 = arith.constant 0 : i32
    %0 = arith.cmpi eq, %arg1, %c0_i32 : i32
    %1 = arith.extui %0 : i1 to i32
    %c0_i32_0 = arith.constant 0 : i32
    %2 = arith.cmpi ne, %1, %c0_i32_0 : i32
    scf.if %2 {
      %cst = arith.constant 0.000000e+00 : f32
      %13 = vector.broadcast %cst : f32 to vector<1x1x128xf32>
      %c0 = arith.constant 0 : index
      %c0_5 = arith.constant 0 : index
      %c0_6 = arith.constant 0 : index
      %14 = vector.load %arg4[%c0, %c0_5, %c0_6] : memref<1x1x128xf32, #tpu.memory_space<vmem>>, vector<1x1x128xf32>
      tpu.vector_store %arg4[%c0, %c0_5, %c0_6], %13 {strides = array<i32>} : memref<1x1x128xf32, #tpu.memory_space<vmem>>, vector<1x1x128xf32>,
    } else {
    }
    %c1_i32 = arith.constant 1 : i32
    %3 = arith.muli %arg0, %c1_i32 : i32
    %4 = arith.addi %3, %arg1 : i32
    %c1_i32_1 = arith.constant 1 : i32
    %5 = arith.addi %4, %c1_i32_1 : i32
    %c16_i32 = arith.constant 16 : i32
    %6 = arith.muli %5, %c16_i32 : i32
    %c16_i32_2 = arith.constant 16 : i32
    %7 = arith.cmpi sgt, %6, %c16_i32_2 : i32
    %true = arith.constant true
    %8 = arith.xori %7, %true : i1
    %9 = arith.extui %8 : i1 to i32
    %c0_i32_3 = arith.constant 0 : i32
    %10 = arith.cmpi ne, %9, %c0_i32_3 : i32
    scf.if %10 {
      %c0 = arith.constant 0 : index
      %c0_5 = arith.constant 0 : index
      %13 = vector.load %arg3[%c0, %c0_5] : memref<16x128xf32, #tpu.memory_space<vmem>>, vector<16x128xf32>
      %c0_6 = arith.constant 0 : index
      %c0_7 = arith.constant 0 : index
      %14 = vector.load %arg2[%c0_6, %c0_7] : memref<16x128xf32, #tpu.memory_space<vmem>>, vector<16x128xf32>
      %15 = arith.subf %13, %14 : vector<16x128xf32>
      %16 = math.absf %15 : vector<16x128xf32>
      %c0_8 = arith.constant 0 : index
      %c0_9 = arith.constant 0 : index
      %c0_10 = arith.constant 0 : index
      %17 = vector.load %arg4[%c0_8, %c0_9, %c0_10] : memref<1x1x128xf32, #tpu.memory_space<vmem>>, vector<1x1x128xf32>
      %cst = arith.constant dense<0.000000e+00> : vector<128xf32>
      %18 = vector.multi_reduction <add>, %16, %cst [0] : vector<16x128xf32> to vector<128xf32>
      %19 = vector.shape_cast %18 : vector<128xf32> to vector<1x128xf32>
      %20 = vector.shape_cast %19 : vector<1x128xf32> to vector<1x1x128xf32>
      %21 = arith.addf %17, %20 : vector<1x1x128xf32>
      %c0_11 = arith.constant 0 : index
      %c0_12 = arith.constant 0 : index
      %c0_13 = arith.constant 0 : index
      %22 = vector.load %arg4[%c0_11, %c0_12, %c0_13] : memref<1x1x128xf32, #tpu.memory_space<vmem>>, vector<1x1x128xf32>
      tpu.vector_store %arg4[%c0_11, %c0_12, %c0_13], %21 {strides = array<i32>} : memref<1x1x128xf32, #tpu.memory_space<vmem>>, vector<1x1x128xf32>,
    } else {
    }
    %11 = arith.extui %7 : i1 to i32
    %c0_i32_4 = arith.constant 0 : i32
    %12 = arith.cmpi ne, %11, %c0_i32_4 : i32
    scf.if %12 {
      %c0 = arith.constant 0 : index
      %c0_5 = arith.constant 0 : index
      %13 = vector.load %arg3[%c0, %c0_5] : memref<16x128xf32, #tpu.memory_space<vmem>>, vector<16x128xf32>
      %c0_6 = arith.constant 0 : index
      %c0_7 = arith.constant 0 : index
      %14 = vector.load %arg2[%c0_6, %c0_7] : memref<16x128xf32, #tpu.memory_space<vmem>>, vector<16x128xf32>
      %15 = arith.subf %13, %14 : vector<16x128xf32>
      %16 = math.absf %15 : vector<16x128xf32>
      %c16_i32_8 = arith.constant 16 : i32
      %17 = arith.muli %4, %c16_i32_8 : i32
      %18 = tpu.iota {dimensions = array<i32: 0>} : vector<16x128xi32>
      %19 = vector.broadcast %17 : i32 to vector<16x128xi32>
      %20 = arith.addi %19, %18 : vector<16x128xi32>
      %c16_i32_9 = arith.constant 16 : i32
      %21 = vector.broadcast %c16_i32_9 : i32 to vector<16x128xi32>
      %22 = arith.cmpi slt, %20, %21 : vector<16x128xi32>
      %cst = arith.constant 0.000000e+00 : f32
      %23 = vector.broadcast %cst : f32 to vector<16x128xf32>
      %24 = arith.select %22, %16, %23 : vector<16x128xi1>, vector<16x128xf32>
      %c0_10 = arith.constant 0 : index
      %c0_11 = arith.constant 0 : index
      %c0_12 = arith.constant 0 : index
      %25 = vector.load %arg4[%c0_10, %c0_11, %c0_12] : memref<1x1x128xf32, #tpu.memory_space<vmem>>, vector<1x1x128xf32>
      %cst_13 = arith.constant dense<0.000000e+00> : vector<128xf32>
      %26 = vector.multi_reduction <add>, %24, %cst_13 [0] : vector<16x128xf32> to vector<128xf32>
      %27 = vector.shape_cast %26 : vector<128xf32> to vector<1x128xf32>
      %28 = vector.shape_cast %27 : vector<1x128xf32> to vector<1x1x128xf32>
      %29 = arith.addf %25, %28 : vector<1x1x128xf32>
      %c0_14 = arith.constant 0 : index
      %c0_15 = arith.constant 0 : index
      %c0_16 = arith.constant 0 : index
      %30 = vector.load %arg4[%c0_14, %c0_15, %c0_16] : memref<1x1x128xf32, #tpu.memory_space<vmem>>, vector<1x1x128xf32>
      tpu.vector_store %arg4[%c0_14, %c0_15, %c0_16], %29 {strides = array<i32>} : memref<1x1x128xf32, #tpu.memory_space<vmem>>, vector<1x1x128xf32>,
    } else {
    }
    return
  }
  func.func @transform_0(%arg0: i32, %arg1: i32) -> (i32, i32) {
    %c1_i32 = arith.constant 1 : i32
    %0 = arith.muli %arg0, %c1_i32 : i32
    %1 = arith.addi %0, %arg1 : i32
    %c0_i32 = arith.constant 0 : i32
    %2 = arith.minsi %1, %c0_i32 : i32
    %c0_i32_0 = arith.constant 0 : i32
    %c0_i32_1 = arith.constant 0 : i32
    return %2, %c0_i32_0 : i32, i32
  }
  func.func @transform_1(%arg0: i32, %arg1: i32) -> (i32, i32) {
    %c1_i32 = arith.constant 1 : i32
    %0 = arith.muli %arg0, %c1_i32 : i32
    %1 = arith.addi %0, %arg1 : i32
    %c0_i32 = arith.constant 0 : i32
    %2 = arith.minsi %1, %c0_i32 : i32
    %c0_i32_0 = arith.constant 0 : i32
    %c0_i32_1 = arith.constant 0 : i32
    return %2, %c0_i32_0 : i32, i32
  }
  func.func @transform_2(%arg0: i32, %arg1: i32) -> (i32, i32, i32) {
    %c0_i32 = arith.constant 0 : i32
    %c0_i32_0 = arith.constant 0 : i32
    %c0_i32_1 = arith.constant 0 : i32
    return %arg0, %c0_i32, %c0_i32_0 : i32, i32, i32
  }
}

</mosaic_0001>

<bundles_post_ra>
// kernel: tpu_custom_call.1
= control target key start
LH: loop header
LB: loop body
LE: loop exit
PB: predicated region body
PF: predicated region fallthrough
CT: control target
= control target key end

     0   :  { %7 = vsyncpa [#allocation3], 0  ;;  %s245_s0 = inlined_call_operand.hbm [shape: f32[16,128], index: 0, kind: input, shape index: {}]   ;;  %s246_s1 = inlined_call_operand.hbm [shape: f32[16,128], index: 1, kind: input, shape index: {}]   ;;  %s247_s2 = inlined_call_operand.hbm [shape: f32[1,1,128], index: 2, kind: output, shape index: {}]  }
   0x1   :  { %8 = vsyncpa [#allocation6], 0 }
   0x2   :  { %9 = vsyncpa [#allocation4], 0  ;;  %s215_s9 = smov [#allocation2]  }
   0x3   :  { %s21_s10 = sshll.u32 %s215_s9, 4  ;;  %s22_s10 = int_to_ptr.vmem [resolvable:$true] %s21_s10 }
   0x4   :  { %s157_s11 = scalar_lea.vmem %s22_s10, 256  ;;  %p162_p1 = scmp.lt.s32.totalorder %s22_s10, %s22_s10 }
   0x5   :  { %p158_p0 = scmp.ne.s32.totalorder %s22_s10, %s157_s11  ;;  %p163_p2 = scmp.lt.s32.totalorder %s157_s11, %s157_s11 }
   0x7   :  { %p164_p3 = por %p163_p2, %p162_p1 }
   0x9   :  { %p165_p4 = pnand %p164_p3, %p158_p0 }
   0xb   :  { %168 = shalt.err (!%p165_p4)
}
   0xc   :  { %s216_s12 = smov 128   ;;  %s217_s13 = smov 8  }
   0xd   :  { %27 = dma.hbm_to_vmem [thread:$0]  %s245_s0, 256, %s22_s10, [#allocation3], %s216_s12, %s216_s12, %s217_s13  }
   0xe   :  { %s218_s16 = smov [#allocation5]  }
   0xf   :  { %s39_s17 = sshll.u32 %s218_s16, 4  ;;  %s40_s17 = int_to_ptr.vmem [resolvable:$true] %s39_s17 }
  0x10   :  { %s177_s18 = scalar_lea.vmem %s40_s17, 256  ;;  %p182_p6 = scmp.lt.s32.totalorder %s40_s17, %s40_s17 }
  0x11   :  { %p178_p5 = scmp.ne.s32.totalorder %s40_s17, %s177_s18  ;;  %p183_p7 = scmp.lt.s32.totalorder %s177_s18, %s177_s18 }
  0x13   :  { %p184_p8 = por %p183_p7, %p182_p6 }
  0x15   :  { %p185_p9 = pnand %p184_p8, %p178_p5 }
  0x17   :  { %188 = shalt.err (!%p185_p9)
}
  0x18   :  { %45 = dma.hbm_to_vmem [thread:$0]  %s246_s1, 256, %s40_s17, [#allocation6], %s216_s12, %s216_s12, %s217_s13  }
  0x19   :  { %209 = dma.done.wait [#allocation3], 256  }
  0x1a   :  { %210 = vsyncadd [#allocation3], 4294967040 }
  0x1b   :  { %211 = dma.done.wait [#allocation6], 256  }
  0x1c   :  { %212 = vsyncadd [#allocation6], 4294967040  ;;  %v219_v0 = vmov 0.0   ;;  %v73_v1 = vld [vmem:[#allocation5] sm:$0xff]  ;;  %v74_v2 = vld [vmem:[#allocation5 + $0x8] sm:$0xff]  ;;  %s220_s0 = smov [#allocation7]  }
  0x1d   :  { %64 = vst [vmem:[#allocation7] sm:$0x1] %v219_v0  ;;  %v75_v3 = vld [vmem:[#allocation2] sm:$0xff]  ;;  %v76_v4 = vld [vmem:[#allocation2 + $0x8] sm:$0xff]  ;;  %s129_s1 = sshll.u32 %s220_s0, 4  ;;  %s130_s1 = int_to_ptr.vmem [resolvable:$true] %s129_s1 }
  0x1e   :  { %v77_v5 = vsub.f32 %v73_v1, %v75_v3  ;;  %v78_v6 = vsub.f32 %v74_v2, %v76_v4  ;;  %s189_s21 = scalar_lea.vmem %s130_s1, 16  ;;  %s193_s22 = scalar_lea.vmem %s130_s1, 32 }
  0x1f   :  { %p190_p10 = scmp.ne.s32.totalorder %s130_s1, %s189_s21  ;;  %p194_p11 = scmp.lt.s32.totalorder %s130_s1, %s130_s1 }
  0x20   :  { %v79_v7 = vand.u32 2147483647, %v77_v5  ;;  %v80_v8 = vand.u32 2147483647, %v78_v6  ;;  %p195_p12 = scmp.lt.s32.totalorder %s193_s22, %s189_s21 }
  0x22   :  { %v82_v9 = vadd.f32 %v80_v8, %v79_v7  ;;  %p196_p13 = por %p195_p12, %p194_p11 }
  0x24   :  { %v83_v10 = vrot.slane %v82_v9, 4  ;;  %v81_v15 = vld [vmem:[#allocation7] sm:$0x1]  ;;  %p197_p0 = pnand %p196_p13, %p190_p10 }
  0x26   :  { %v84_v11 = vadd.f32 %v83_v10, %v82_v9 }
  0x28   :  { %v85_v12 = vrot.slane %v84_v11, 2 }
  0x2a   :  { %v86_v13 = vadd.f32 %v85_v12, %v84_v11 }
  0x2c   :  { %v87_v14 = vrot.slane %v86_v13, 1 }
  0x2e   :  { %v88_v16 = vadd.f32 %v87_v14, %v86_v13 }
  0x30   :  { %v89_v17 = vadd.f32 %v88_v16, %v81_v15 }
  0x32   :  { %90 = vst [vmem:[#allocation7] sm:$0x1] %v89_v17 }
  0x33   :  { %200 = shalt.err (!%p197_p0)
}
  0x34   :  { %132 = dma.vmem_to_hbm [thread:$0]  %s130_s1, 16, %s247_s2, [#allocation4]  }
  0x35   :  { %213 = dma.done.wait [#allocation4], 16  }
  0x36   :  { %214 = vsyncadd [#allocation4], 4294967280 }
  0x37   :  { %136 = vsyncpa [#allocation3], 1 }
  0x38   :  { %137 = vsyncpa [#allocation6], 1 }
  0x39   :  { %138 = vsyncpa [#allocation4], 1 }

</bundles_post_ra>
